<compile_context>
chip_gen: v5e
topology: v5e:2x2
jax: 0.10.0
libtpu: 0.0.40
codegen_flags: <defaults>
</compile_context>

<pallas_src>
import jax
import jax.numpy as jnp
from jax.experimental import pallas as pl
from jax.experimental.pallas import tpu as pltpu


# ----------------------------------------------------------------------------
# Generation-aware tiling for the EMA update slab
# ----------------------------------------------------------------------------
_LANES = 512            # wide lane dim -> large, lane-dense, unmasked DMAs

_TILING_CACHE = None


def _tiling():
    """(max_block_rows, vmem_limit_bytes) chosen per TPU generation."""
    global _TILING_CACHE
    if _TILING_CACHE is None:
        kind = ""
        try:
            kind = jax.devices()[0].device_kind.lower()
        except Exception:
            pass
        if ("v5 lite" in kind) or ("v5e" in kind) or ("v5lite" in kind):
            # v5e: 16 MiB scoped-VMEM default -> cap at 2 MiB blocks
            # (3 arrays x 2 pipeline buffers x 2 MiB = 12 MiB).
            _TILING_CACHE = (1024, 14 << 20)
        else:
            # v6e / v7x: 4 MiB blocks (3 x 2 x 4 MiB = 24 MiB) with an explicit
            # 28 MiB limit; at 1.4-3.2 TB/s HBM this keeps the ~0.35 us
            # per-grid-step overhead under ~10% of step time.
            _TILING_CACHE = (2048, 28 << 20)
    return _TILING_CACHE


def _slab_layout(total_elems, max_block_rows):
    """Rows (padded) and block_rows for a [rows, _LANES] f32 slab."""
    rows = max(1, -(-total_elems // _LANES))
    if rows <= max_block_rows:
        # One block covering the whole (small) slab: block == full array dims,
        # so the (8, 128) divisibility rule is satisfied trivially.
        return rows, rows
    block_rows = max_block_rows
    rows = -(-rows // block_rows) * block_rows
    return rows, block_rows


# ----------------------------------------------------------------------------
# Kernel 1: EMA parameter update (elementwise, HBM-bandwidth bound)
# ----------------------------------------------------------------------------
def _ema_update_kernel(shadow_ref, param_ref, decay_ref, out_ref):
    d = decay_ref[0]                      # scalar decay, read from SMEM
    s = shadow_ref[...]
    out_ref[...] = s - (1.0 - d) * (s - param_ref[...])


def _ema_update_impl(shadow_flat, param_flat, decay_arr, block_rows, vmem_limit):
    """shadow_flat / param_flat: f32[R, _LANES]; R a multiple of block_rows."""
    R, C = shadow_flat.shape
    return pl.pallas_call(
        _ema_update_kernel,
        out_shape=jax.ShapeDtypeStruct((R, C), jnp.float32),
        grid=(R // block_rows,),
        in_specs=[
            pl.BlockSpec((block_rows, C), lambda i: (i, 0)),
            pl.BlockSpec((block_rows, C), lambda i: (i, 0)),
            pl.BlockSpec(memory_space=pltpu.MemorySpace.SMEM),  # decay scalar
        ],
        out_specs=pl.BlockSpec((block_rows, C), lambda i: (i, 0)),
        # In-place update of the shadow slab: output 0 aliases input 0.
        # (True in-place only because the caller jits with donate_argnums=(0,).)
        input_output_aliases={0: 0},
        compiler_params=pltpu.CompilerParams(
            dimension_semantics=("parallel",),   # v7x: 2 TCs stream half each
            vmem_limit_bytes=vmem_limit),
    )(shadow_flat, param_flat, decay_arr)


# jit + donation: guarantees the alias holds (no defensive copy of the shadow)
# and collapses dispatch overhead.  block_rows / vmem_limit are static.
ema_update_flat = jax.jit(_ema_update_impl, static_argnums=(3, 4),
                          donate_argnums=(0,))


# ----------------------------------------------------------------------------
# Kernel 2: wrapped model forward (1x1 conv == per-pixel linear), NCHW layout
# ----------------------------------------------------------------------------
def _conv1x1_kernel(x_ref, w_ref, b_ref, o_ref):
    # x_ref: (N, Cin, L)   whole batch, spatial axis L = H*W on lanes
    # w_ref: (Cout, Cin)   PyTorch conv-1x1 weight (squeezed)
    # b_ref: (Cout, 1)
    x = x_ref[...]                            # (N, Cin, L)
    w = w_ref[...]                            # (Cout, Cin)
    b = b_ref[...]                            # (Cout, 1)
    n_imgs, cin, L = x.shape
    cout = w.shape[0]
    # Bias broadcast hoisted once (JAX does not CSE broadcast_in_dim).
    b_full = jnp.broadcast_to(b, (cout, L)).astype(jnp.float32)
    # VPU formulation: Cin fused multiply-adds over lane-dense (Cout, L) tiles.
    # Cin=4 / Cout=8 would leave the 256x256 MXU ~idle; if channels grow to
    # >=64-128 switch this to one jnp.dot(w, x[n]) per image instead.
    for n in range(n_imgs):                   # static unroll (N is small)
        acc = b_full
        for ci in range(cin):                 # static unroll (Cin is small)
            acc = acc + w[:, ci:ci + 1] * x[n, ci:ci + 1, :]
        o_ref[n] = acc.astype(o_ref.dtype)


@jax.jit
def conv1x1_forward(x_nchw, weight, bias):
    """weight: [Cout, Cin] (PyTorch conv-1x1 layout, squeezed), bias: [Cout]."""
    N, Cin, H, W = x_nchw.shape
    Cout = weight.shape[0]
    L = H * W
    x3d = x_nchw.reshape(N, Cin, L)           # contiguous reshape, no transpose
    b2d = bias.reshape(Cout, 1)
    out3d = pl.pallas_call(
        _conv1x1_kernel,
        out_shape=jax.ShapeDtypeStruct((N, Cout, L), jnp.float32),
        grid=(1,),                            # single step: ~24 KiB working set
        in_specs=[
            pl.BlockSpec((N, Cin, L), lambda i: (0, 0, 0)),
            pl.BlockSpec((Cout, Cin), lambda i: (0, 0)),
            pl.BlockSpec((Cout, 1), lambda i: (0, 0)),
        ],
        out_specs=pl.BlockSpec((N, Cout, L), lambda i: (0, 0, 0)),
    )(x3d, weight, b2d)
    return out3d.reshape(N, Cout, H, W)       # contiguous reshape back to NCHW


# ----------------------------------------------------------------------------
# EMA wrapper (host-side glue mirroring the PyTorch module semantics)
# ----------------------------------------------------------------------------
class EMA:
    def __init__(self, model_params: dict, decay: float):
        self.decay = decay
        self.training = True
        print('preparing EMA with decay={}'.format(decay))

        # Bookkeeping for the flat slabs, built once.
        self._names = sorted(model_params.keys())
        self._shapes = [tuple(model_params[n].shape) for n in self._names]
        self._sizes = [int(model_params[n].size) for n in self._names]
        self._total = sum(self._sizes)
        max_block_rows, self._vmem_limit = _tiling()
        self._rows, self._block_rows = _slab_layout(self._total, max_block_rows)
        self._padded = self._rows * _LANES

        # Live params AND shadow live in persistent, pre-flattened slabs.
        # update() never re-flattens; the training step writes new param
        # values into the param slab via load_model_params().
        self._param_flat = self._flatten(model_params)
        self._shadow_flat = jnp.copy(self._param_flat)   # == deepcopy(model)
        self._param_cache = None              # unflattened views, built lazily
        self._shadow_cache = None

    # -- slab helpers --------------------------------------------------------
    def _flatten(self, params):
        flat = jnp.concatenate(
            [jnp.ravel(jnp.asarray(params[n], dtype=jnp.float32))
             for n in self._names])
        flat = jnp.pad(flat, (0, self._padded - self._total))
        return flat.reshape(self._rows, _LANES)

    def _unflatten(self, slab):
        flat = slab.reshape(-1)
        out, off = {}, 0
        for n, sz, shp in zip(self._names, self._sizes, self._shapes):
            out[n] = flat[off:off + sz].reshape(shp)
            off += sz
        return out

    # -- parameter views -----------------------------------------------------
    @property
    def model(self):
        if self._param_cache is None:
            self._param_cache = self._unflatten(self._param_flat)
        return self._param_cache

    @property
    def shadow(self):
        if self._shadow_cache is None:
            self._shadow_cache = self._unflatten(self._shadow_flat)
        return self._shadow_cache

    def load_model_params(self, params):
        """Training-step analog of the optimizer writing new param values."""
        self._param_flat = self._flatten(params)
        self._param_cache = None

    # -- EMA update -----------------------------------------------------------
    def update(self, epoch):
        if not self.training:
            print('EMA update should only be called during training')
            return
        decay = 0.99 if epoch <= 5 else self.decay
        decay_arr = jnp.asarray([decay], dtype=jnp.float32)
        # Shadow slab is donated -> the aliased pallas output is truly in place.
        self._shadow_flat = ema_update_flat(
            self._shadow_flat, self._param_flat, decay_arr,
            self._block_rows, self._vmem_limit)
        self._shadow_cache = None
        # TODO(synk): the toy model has no buffers; named_buffers copy is a no-op here.

    # -- forward --------------------------------------------------------------
    def __call__(self, x):
        params = self.model if self.training else self.shadow
        return conv1x1_forward(x, params['weight'], params['bias'])


if __name__ == "__main__":
    key = jax.random.PRNGKey(0)
    kx, kw, kb, kg = jax.random.split(key, 4)

    N, Cin, Cout, H, W = 2, 4, 8, 16, 16
    x = jax.random.normal(kx, (N, Cin, H, W), dtype=jnp.float32)
    weight = 0.1 * jax.random.normal(kw, (Cout, Cin), dtype=jnp.float32)
    bias = 0.1 * jax.random.normal(kb, (Cout,), dtype=jnp.float32)

    ema = EMA({'weight': weight, 'bias': bias}, decay=0.999)

    # training mode -> forward through the live model
    ema.training = True
    out_train = ema(x)

    # simulate one "training step": new optimizer values are written into the
    # resident flat param slab once; update() itself never re-flattens.
    new_weight = weight + 0.05 * jax.random.normal(kg, (Cout, Cin),
                                                   dtype=jnp.float32)
    new_bias = bias + 0.01
    ema.load_model_params({'weight': new_weight, 'bias': new_bias})

    # EMA update at epoch 3 -> decay is forced to 0.99
    ema.update(epoch=3)

    # eval mode -> forward through the shadow model
    ema.training = False
    out_eval = ema(x)

    shadow_w = ema.shadow['weight']
    shadow_b = ema.shadow['bias']
    jax.block_until_ready((out_train, out_eval, shadow_w, shadow_b))

    # ---- pure-JAX reference checks ----
    def ref_fwd(xi, w, b):
        x2 = jnp.transpose(xi, (0, 2, 3, 1)).reshape(-1, Cin)
        y = x2 @ w.T + b
        return jnp.transpose(y.reshape(N, H, W, Cout), (0, 3, 1, 2))

    ref_sw = weight - (1.0 - 0.99) * (weight - new_weight)
    ref_sb = bias - (1.0 - 0.99) * (bias - new_bias)
    assert jnp.allclose(out_train, ref_fwd(x, weight, bias), atol=1e-5)
    assert jnp.allclose(shadow_w, ref_sw, atol=1e-6)
    assert jnp.allclose(shadow_b, ref_sb, atol=1e-6)
    assert jnp.allclose(out_eval, ref_fwd(x, ref_sw, ref_sb), atol=1e-5)

    print("KERNEL_OK")
</pallas_src>

<mosaic_0001>
module attributes {stable_mosaic.version = 11 : i64} {
  func.func @_conv1x1_kernel(%arg0: i32, %arg1: memref<2x4x256xf32, #tpu.memory_space<vmem>>, %arg2: memref<8x4xf32, #tpu.memory_space<vmem>>, %arg3: memref<8x1xf32, #tpu.memory_space<vmem>>, %arg4: memref<2x8x256xf32, #tpu.memory_space<vmem>>) attributes {dimension_semantics = [#tpu.dimension_semantics<arbitrary>], iteration_bounds = array<i64: 1>, scalar_prefetch = 0 : i64, scratch_operands = 0 : i64, tpu.core_type = #tpu.core_type<tc>, window_params = [{pipeline_mode = #tpu.pipeline_mode<synchronous>, transform_indices = @transform_0, window_bounds = array<i64: 2, 4, 256>}, {pipeline_mode = #tpu.pipeline_mode<synchronous>, transform_indices = @transform_1, window_bounds = array<i64: 8, 4>}, {pipeline_mode = #tpu.pipeline_mode<synchronous>, transform_indices = @transform_2, window_bounds = array<i64: 8, 1>}, {pipeline_mode = #tpu.pipeline_mode<synchronous>, transform_indices = @transform_3, window_bounds = array<i64: 2, 8, 256>}]} {
    %c0 = arith.constant 0 : index
    %c0_0 = arith.constant 0 : index
    %c0_1 = arith.constant 0 : index
    %0 = vector.load %arg1[%c0, %c0_0, %c0_1] : memref<2x4x256xf32, #tpu.memory_space<vmem>>, vector<2x4x256xf32>
    %c0_2 = arith.constant 0 : index
    %c0_3 = arith.constant 0 : index
    %1 = vector.load %arg2[%c0_2, %c0_3] : memref<8x4xf32, #tpu.memory_space<vmem>>, vector<8x4xf32>
    %c0_4 = arith.constant 0 : index
    %c0_5 = arith.constant 0 : index
    %2 = vector.load %arg3[%c0_4, %c0_5] : memref<8x1xf32, #tpu.memory_space<vmem>>, vector<8x1xf32>
    %3 = vector.shape_cast %2 : vector<8x1xf32> to vector<8x1xf32>
    %4 = vector.broadcast %3 : vector<8x1xf32> to vector<8x256xf32>
    %5 = vector.extract_strided_slice %1 {offsets = [0, 0], sizes = [8, 1], strides = [1, 1]} : vector<8x4xf32> to vector<8x1xf32>
    %6 = vector.extract_strided_slice %0 {offsets = [0, 0, 0], sizes = [1, 1, 256], strides = [1, 1, 1]} : vector<2x4x256xf32> to vector<1x1x256xf32>
    %7 = vector.shape_cast %6 : vector<1x1x256xf32> to vector<1x256xf32>
    %8 = vector.broadcast %5 : vector<8x1xf32> to vector<8x256xf32>
    %9 = vector.broadcast %7 : vector<1x256xf32> to vector<8x256xf32>
    %10 = arith.mulf %8, %9 : vector<8x256xf32>
    %11 = arith.addf %4, %10 : vector<8x256xf32>
    %12 = vector.extract_strided_slice %1 {offsets = [0, 1], sizes = [8, 1], strides = [1, 1]} : vector<8x4xf32> to vector<8x1xf32>
    %13 = vector.extract_strided_slice %0 {offsets = [0, 1, 0], sizes = [1, 1, 256], strides = [1, 1, 1]} : vector<2x4x256xf32> to vector<1x1x256xf32>
    %14 = vector.shape_cast %13 : vector<1x1x256xf32> to vector<1x256xf32>
    %15 = vector.broadcast %12 : vector<8x1xf32> to vector<8x256xf32>
    %16 = vector.broadcast %14 : vector<1x256xf32> to vector<8x256xf32>
    %17 = arith.mulf %15, %16 : vector<8x256xf32>
    %18 = arith.addf %11, %17 : vector<8x256xf32>
    %19 = vector.extract_strided_slice %1 {offsets = [0, 2], sizes = [8, 1], strides = [1, 1]} : vector<8x4xf32> to vector<8x1xf32>
    %20 = vector.extract_strided_slice %0 {offsets = [0, 2, 0], sizes = [1, 1, 256], strides = [1, 1, 1]} : vector<2x4x256xf32> to vector<1x1x256xf32>
    %21 = vector.shape_cast %20 : vector<1x1x256xf32> to vector<1x256xf32>
    %22 = vector.broadcast %19 : vector<8x1xf32> to vector<8x256xf32>
    %23 = vector.broadcast %21 : vector<1x256xf32> to vector<8x256xf32>
    %24 = arith.mulf %22, %23 : vector<8x256xf32>
    %25 = arith.addf %18, %24 : vector<8x256xf32>
    %26 = vector.extract_strided_slice %1 {offsets = [0, 3], sizes = [8, 1], strides = [1, 1]} : vector<8x4xf32> to vector<8x1xf32>
    %27 = vector.extract_strided_slice %0 {offsets = [0, 3, 0], sizes = [1, 1, 256], strides = [1, 1, 1]} : vector<2x4x256xf32> to vector<1x1x256xf32>
    %28 = vector.shape_cast %27 : vector<1x1x256xf32> to vector<1x256xf32>
    %29 = vector.broadcast %26 : vector<8x1xf32> to vector<8x256xf32>
    %30 = vector.broadcast %28 : vector<1x256xf32> to vector<8x256xf32>
    %31 = arith.mulf %29, %30 : vector<8x256xf32>
    %32 = arith.addf %25, %31 : vector<8x256xf32>
    %c0_6 = arith.constant 0 : index
    %c0_7 = arith.constant 0 : index
    %c0_8 = arith.constant 0 : index
    %33 = vector.load %arg4[%c0_6, %c0_7, %c0_8] : memref<2x8x256xf32, #tpu.memory_space<vmem>>, vector<1x8x256xf32>
    %34 = vector.shape_cast %33 : vector<1x8x256xf32> to vector<8x256xf32>
    %35 = vector.shape_cast %32 : vector<8x256xf32> to vector<1x8x256xf32>
    tpu.vector_store %arg4[%c0_6, %c0_7, %c0_8], %35 {strides = array<i32>} : memref<2x8x256xf32, #tpu.memory_space<vmem>>, vector<1x8x256xf32>,
    %36 = vector.extract_strided_slice %1 {offsets = [0, 0], sizes = [8, 1], strides = [1, 1]} : vector<8x4xf32> to vector<8x1xf32>
    %37 = vector.extract_strided_slice %0 {offsets = [1, 0, 0], sizes = [1, 1, 256], strides = [1, 1, 1]} : vector<2x4x256xf32> to vector<1x1x256xf32>
    %38 = vector.shape_cast %37 : vector<1x1x256xf32> to vector<1x256xf32>
    %39 = vector.broadcast %36 : vector<8x1xf32> to vector<8x256xf32>
    %40 = vector.broadcast %38 : vector<1x256xf32> to vector<8x256xf32>
    %41 = arith.mulf %39, %40 : vector<8x256xf32>
    %42 = arith.addf %4, %41 : vector<8x256xf32>
    %43 = vector.extract_strided_slice %1 {offsets = [0, 1], sizes = [8, 1], strides = [1, 1]} : vector<8x4xf32> to vector<8x1xf32>
    %44 = vector.extract_strided_slice %0 {offsets = [1, 1, 0], sizes = [1, 1, 256], strides = [1, 1, 1]} : vector<2x4x256xf32> to vector<1x1x256xf32>
    %45 = vector.shape_cast %44 : vector<1x1x256xf32> to vector<1x256xf32>
    %46 = vector.broadcast %43 : vector<8x1xf32> to vector<8x256xf32>
    %47 = vector.broadcast %45 : vector<1x256xf32> to vector<8x256xf32>
    %48 = arith.mulf %46, %47 : vector<8x256xf32>
    %49 = arith.addf %42, %48 : vector<8x256xf32>
    %50 = vector.extract_strided_slice %1 {offsets = [0, 2], sizes = [8, 1], strides = [1, 1]} : vector<8x4xf32> to vector<8x1xf32>
    %51 = vector.extract_strided_slice %0 {offsets = [1, 2, 0], sizes = [1, 1, 256], strides = [1, 1, 1]} : vector<2x4x256xf32> to vector<1x1x256xf32>
    %52 = vector.shape_cast %51 : vector<1x1x256xf32> to vector<1x256xf32>
    %53 = vector.broadcast %50 : vector<8x1xf32> to vector<8x256xf32>
    %54 = vector.broadcast %52 : vector<1x256xf32> to vector<8x256xf32>
    %55 = arith.mulf %53, %54 : vector<8x256xf32>
    %56 = arith.addf %49, %55 : vector<8x256xf32>
    %57 = vector.extract_strided_slice %1 {offsets = [0, 3], sizes = [8, 1], strides = [1, 1]} : vector<8x4xf32> to vector<8x1xf32>
    %58 = vector.extract_strided_slice %0 {offsets = [1, 3, 0], sizes = [1, 1, 256], strides = [1, 1, 1]} : vector<2x4x256xf32> to vector<1x1x256xf32>
    %59 = vector.shape_cast %58 : vector<1x1x256xf32> to vector<1x256xf32>
    %60 = vector.broadcast %57 : vector<8x1xf32> to vector<8x256xf32>
    %61 = vector.broadcast %59 : vector<1x256xf32> to vector<8x256xf32>
    %62 = arith.mulf %60, %61 : vector<8x256xf32>
    %63 = arith.addf %56, %62 : vector<8x256xf32>
    %c1 = arith.constant 1 : index
    %c0_9 = arith.constant 0 : index
    %c0_10 = arith.constant 0 : index
    %64 = vector.load %arg4[%c1, %c0_9, %c0_10] : memref<2x8x256xf32, #tpu.memory_space<vmem>>, vector<1x8x256xf32>
    %65 = vector.shape_cast %64 : vector<1x8x256xf32> to vector<8x256xf32>
    %66 = vector.shape_cast %63 : vector<8x256xf32> to vector<1x8x256xf32>
    tpu.vector_store %arg4[%c1, %c0_9, %c0_10], %66 {strides = array<i32>} : memref<2x8x256xf32, #tpu.memory_space<vmem>>, vector<1x8x256xf32>,
    return
  }
  func.func @transform_0(%arg0: i32) -> (i32, i32, i32) {
    %c0_i32 = arith.constant 0 : i32
    %c0_i32_0 = arith.constant 0 : i32
    %c0_i32_1 = arith.constant 0 : i32
    %c0_i32_2 = arith.constant 0 : i32
    return %c0_i32, %c0_i32_0, %c0_i32_1 : i32, i32, i32
  }
  func.func @transform_1(%arg0: i32) -> (i32, i32) {
    %c0_i32 = arith.constant 0 : i32
    %c0_i32_0 = arith.constant 0 : i32
    %c0_i32_1 = arith.constant 0 : i32
    return %c0_i32, %c0_i32_0 : i32, i32
  }
  func.func @transform_2(%arg0: i32) -> (i32, i32) {
    %c0_i32 = arith.constant 0 : i32
    %c0_i32_0 = arith.constant 0 : i32
    %c0_i32_1 = arith.constant 0 : i32
    return %c0_i32, %c0_i32_0 : i32, i32
  }
  func.func @transform_3(%arg0: i32) -> (i32, i32, i32) {
    %c0_i32 = arith.constant 0 : i32
    %c0_i32_0 = arith.constant 0 : i32
    %c0_i32_1 = arith.constant 0 : i32
    %c0_i32_2 = arith.constant 0 : i32
    return %c0_i32, %c0_i32_0, %c0_i32_1 : i32, i32, i32
  }
}

</mosaic_0001>

<bundles_post_ra>
// kernel: conv1x1_forward.1
= control target key start
LH: loop header
LB: loop body
LE: loop exit
PB: predicated region body
PF: predicated region fallthrough
CT: control target
= control target key end

     0   :  { %v142_v0 = vmov 0   ;;  %v143_v1 = vmov 1   ;;  %v144_v3 = vmov 3   ;;  %v145_v5 = vmov 2   ;;  %s190_s1 = inlined_call_operand.vmem [shape: f32[8,4], index: 1, kind: input, shape index: {}]   ;;  %s191_s2 = inlined_call_operand.vmem [shape: f32[8,1], index: 2, kind: input, shape index: {}]   ;;  %s192_s0 = inlined_call_operand.vmem [shape: f32[2,4,256], index: 0, kind: input, shape index: {}]   ;;  %s193_s3 = inlined_call_operand.vmem [shape: f32[2,8,256], index: 3, kind: output, shape index: {}]  }
   0x1   :  { %137 = vset.pattern.permute.xlu0 %v142_v0  ;;  %138 = vset.pattern.permute.xlu1 %v143_v1  ;;  %v16_v2 = vld [vmem:[%s190_s1] sm:$0xff]  ;;  %v15_v7 = vld [vmem:[%s192_s0 + $0x8] sm:$0xff] }
   0x2   :  { %25 = vperm.xlu0 %137, %v16_v2   ;;  %40 = vperm.xlu1 %138, %v16_v2   ;;  %v17_v4 = vld [vmem:[%s191_s2] sm:$0xff]  ;;  %v114_v10 = vperm.slane %v15_v7, 3  ;;  %v84_v13 = vperm.slane %v15_v7, 0  ;;  %v85_v14 = vperm.slane %v15_v7, 4  ;;  %v94_v19 = vperm.slane %v15_v7, 1 }
   0x3   :  { %140 = vset.pattern.permute.xlu2 %v144_v3  ;;  %v14_v6 = vld [vmem:[%s192_s0] sm:$0xff]  ;;  %v95_v20 = vperm.slane %v15_v7, 5  ;;  %v104_v23 = vperm.slane %v15_v7, 2  ;;  %v105_v24 = vperm.slane %v15_v7, 6  ;;  %v115_v27 = vperm.slane %v15_v7, 7 }
   0x4   :  { %68 = vperm.xlu2 %140, %v16_v2   ;;  %v71_v8 = vperm.slane %v14_v6, 3  ;;  %v72_v9 = vperm.slane %v14_v6, 7  ;;  %v29_v11 = vperm.slane %v14_v6, 0  ;;  %v30_v12 = vperm.slane %v14_v6, 4 }
   0x5   :  { %v43_v17 = vperm.slane %v14_v6, 1  ;;  %v44_v18 = vperm.slane %v14_v6, 5  ;;  %v57_v21 = vperm.slane %v14_v6, 2  ;;  %v58_v22 = vperm.slane %v14_v6, 6 }
   0x6   :  { %v75_v25 = vperm.slane %v71_v8, 3  ;;  %v76_v26 = vperm.slane %v72_v9, 3  ;;  %v118_v28 = vperm.slane %v114_v10, 3  ;;  %v33_v29 = vperm.slane %v29_v11, 0 }
   0x7   :  { %v34_v30 = vperm.slane %v30_v12, 0  ;;  %v88_v31 = vperm.slane %v84_v13, 0  ;;  %v89_v32 = vperm.slane %v85_v14, 0  ;;  %v47_v34 = vperm.slane %v43_v17, 1 }
   0x8   :  { %v48_v35 = vperm.slane %v44_v18, 1  ;;  %v98_v36 = vperm.slane %v94_v19, 1  ;;  %v99_v37 = vperm.slane %v95_v20, 1  ;;  %v61_v38 = vperm.slane %v57_v21, 2 }
   0x9   :  { %v62_v39 = vperm.slane %v58_v22, 2  ;;  %v108_v40 = vperm.slane %v104_v23, 2  ;;  %v109_v41 = vperm.slane %v105_v24, 2  ;;  %v119_v44 = vperm.slane %v115_v27, 3 }
   0xa   :  { %20 = vperm.xlu0 %137, %v17_v4   ;;  %139 = vset.pattern.permute.xlu1 %v145_v5 }
   0xb   :  { %54 = vperm.xlu1 %139, %v16_v2  }
  0x12   :  { %141 = vset.pattern.permute.xlu0 %v144_v3 }
  0x5e   :  { %v69_v33 = vpop.permute.xlu2 %68 }
  0x5f   :  { %v77_v42 = vmul.f32 %v75_v25, %v69_v33  ;;  %v78_v43 = vmul.f32 %v76_v26, %v69_v33  ;;  %v120_v45 = vmul.f32 %v118_v28, %v69_v33  ;;  %v121_v4 = vmul.f32 %v119_v44, %v69_v33 }
  0x74   :  { %v26_v15 = vpop.permute.xlu0 %25  ;;  %v41_v16 = vpop.permute.xlu1 %40 }
  0x75   :  { %v35_v46 = vmul.f32 %v33_v29, %v26_v15  ;;  %v36_v47 = vmul.f32 %v34_v30, %v26_v15  ;;  %v90_v48 = vmul.f32 %v88_v31, %v26_v15  ;;  %v91_v49 = vmul.f32 %v89_v32, %v26_v15 }
  0x76   :  { %v49_v50 = vmul.f32 %v47_v34, %v41_v16  ;;  %v50_v51 = vmul.f32 %v48_v35, %v41_v16  ;;  %v100_v52 = vmul.f32 %v98_v36, %v41_v16  ;;  %v101_v53 = vmul.f32 %v99_v37, %v41_v16 }
  0x7c   :  { %v21_v54 = vpop.permute.xlu0 %20 }
  0x7d   :  { %v37_v55 = vadd.f32 %v35_v46, %v21_v54  ;;  %v38_v56 = vadd.f32 %v36_v47, %v21_v54  ;;  %v92_v57 = vadd.f32 %v90_v48, %v21_v54  ;;  %v93_v58 = vadd.f32 %v91_v49, %v21_v54  ;;  %v55_v59 = vpop.permute.xlu1 %54 }
  0x7e   :  { %v63_v60 = vmul.f32 %v61_v38, %v55_v59  ;;  %v64_v61 = vmul.f32 %v62_v39, %v55_v59  ;;  %v110_v62 = vmul.f32 %v108_v40, %v55_v59  ;;  %v111_v63 = vmul.f32 %v109_v41, %v55_v59 }
  0x7f   :  { %v51_v0 = vadd.f32 %v49_v50, %v37_v55  ;;  %v52_v1 = vadd.f32 %v50_v51, %v38_v56  ;;  %v102_v2 = vadd.f32 %v100_v52, %v92_v57  ;;  %v103_v3 = vadd.f32 %v101_v53, %v93_v58 }
  0x81   :  { %v65_v5 = vadd.f32 %v63_v60, %v51_v0  ;;  %v66_v6 = vadd.f32 %v64_v61, %v52_v1  ;;  %v112_v7 = vadd.f32 %v110_v62, %v102_v2  ;;  %v113_v8 = vadd.f32 %v111_v63, %v103_v3 }
  0x83   :  { %v79_v9 = vadd.f32 %v77_v42, %v65_v5  ;;  %v80_v10 = vadd.f32 %v78_v43, %v66_v6  ;;  %v122_v11 = vadd.f32 %v120_v45, %v112_v7  ;;  %v123_v12 = vadd.f32 %v121_v4, %v113_v8 }
  0x85   :  { %81 = vst [vmem:[%s193_s3] sm:$0xff] %v79_v9 }
  0x86   :  { %82 = vst [vmem:[%s193_s3 + $0x8] sm:$0xff] %v80_v10 }
  0x87   :  { %131 = vst [vmem:[%s193_s3 + $0x10] sm:$0xff] %v122_v11 }
  0x88   :  { %132 = vst [vmem:[%s193_s3 + $0x18] sm:$0xff] %v123_v12 }

</bundles_post_ra>
